<compile_context>
chip_gen: v7x
topology: tpu7x:2x2x1
jax: 0.10.0
libtpu: 0.0.40
codegen_flags: <defaults>
</compile_context>

<pallas_src>
import functools

import jax
import jax.numpy as jnp
from jax.experimental import pallas as pl
from jax.experimental.pallas import tpu as pltpu


_VMEM_LIMIT = 48 * 1024 * 1024  # <= 64 MiB physical on v7x; plenty on v5e/v6e


def _round_up(x, m):
    return ((x + m - 1) // m) * m


def _choose_m_tiling(m, cap):
    """Pick (tm, mp): tm an exact divisor of mp, mp == m whenever possible."""
    if m <= cap:
        return m, m                       # full-extent block (always legal)
    cap8 = max(8, cap - cap % 8)
    t = cap8
    while t >= 8:
        if m % t == 0:
            return t, m
        t -= 8
    mp = _round_up(m, cap8)               # rare fallback: zero-pad rows
    return cap8, mp


# ------------------------------------------------------------------
# Pallas kernel 1: 1x1 conv as tiled matmul (optionally + BN partial stats)
# ------------------------------------------------------------------
def _mm_kernel(x_ref, w_ref, o_ref):
    o_ref[...] = jnp.dot(x_ref[...], w_ref[...],
                         preferred_element_type=jnp.float32).astype(o_ref.dtype)


def _mm_stats_kernel(x_ref, w_ref, o_ref, s_ref):
    y = jnp.dot(x_ref[...], w_ref[...], preferred_element_type=jnp.float32)
    o_ref[...] = y.astype(o_ref.dtype)
    s_ref[...] = jnp.stack([jnp.sum(y, axis=0), jnp.sum(y * y, axis=0)],
                           axis=0)[None]                  # (1, 2, tn)


def _conv1x1_matmul(x, layer, *, with_stats, out_dtype):
    N, H, W, C = x.shape
    M = N * H * W
    Kp, Np = layer["w"].shape

    xf = x.reshape(M, C).astype(jnp.bfloat16)
    if C != Kp:                                   # only the tiny backbone stubs
        xf = jnp.pad(xf, ((0, 0), (0, Kp - C)))
    tm, Mp = _choose_m_tiling(M, 512)
    if Mp != M:                                   # rare; zero rows keep BN sums exact
        xf = jnp.pad(xf, ((0, Mp - M), (0, 0)))

    tn = 256 if Np % 256 == 0 else 128
    grid = (Mp // tm, Np // tn)
    in_specs = [pl.BlockSpec((tm, Kp), lambda i, j: (i, 0)),
                pl.BlockSpec((Kp, tn), lambda i, j: (0, j))]
    cparams = pltpu.CompilerParams(
        dimension_semantics=("parallel", "parallel"),
        vmem_limit_bytes=_VMEM_LIMIT)

    if with_stats:
        y, s = pl.pallas_call(
            _mm_stats_kernel,
            out_shape=(jax.ShapeDtypeStruct((Mp, Np), out_dtype),
                       jax.ShapeDtypeStruct((grid[0], 2, Np), jnp.float32)),
            grid=grid,
            in_specs=in_specs,
            out_specs=(pl.BlockSpec((tm, tn), lambda i, j: (i, j)),
                       pl.BlockSpec((1, 2, tn), lambda i, j: (i, 0, j))),
            compiler_params=cparams,
        )(xf, layer["w"])
        return y, jnp.sum(s, axis=0), M, (N, H, W)

    y = pl.pallas_call(
        _mm_kernel,
        out_shape=jax.ShapeDtypeStruct((Mp, Np), out_dtype),
        grid=grid,
        in_specs=in_specs,
        out_specs=pl.BlockSpec((tm, tn), lambda i, j: (i, j)),
        compiler_params=cparams,
    )(xf, layer["w"])
    return y, None, M, (N, H, W)


# ------------------------------------------------------------------
# Pallas kernel 2: fused dilated 3x3 conv (9-tap in-kernel accumulation)
#                  + BN partial stats.  One output row per grid step.
# ------------------------------------------------------------------
def _conv3x3_kernel(r0_ref, r1_ref, r2_ref, w_ref, o_ref, s_ref,
                    *, Wo, dil, woff):
    rows = (r0_ref, r1_ref, r2_ref)
    acc = None
    for ky in range(3):
        row = rows[ky][0, 0]                         # (Wp, Cp) bf16 in VMEM
        for kx in range(3):
            start = woff + kx * dil                  # static slice
            x_tap = row[start:start + Wo, :]         # (Wo, Cp)
            y_tap = jnp.dot(x_tap, w_ref[3 * ky + kx],
                            preferred_element_type=jnp.float32)
            acc = y_tap if acc is None else acc + y_tap
    o_ref[0, 0] = acc.astype(o_ref.dtype)
    s_ref[0, 0] = jnp.stack([jnp.sum(acc, axis=0), jnp.sum(acc * acc, axis=0)],
                            axis=0)                  # (2, tn)


def _make_row_index_map(off):
    def index_map(n, y, j):
        return (n, y + off, 0, 0)      # H block size is 1 -> element row offset
    return index_map


def _conv3x3_matmul(xp, layer, *, Ho, Wo, dilation, base_offset):
    N, Hp, Wp, Cp = xp.shape
    _, Cp_w, Np = layer["w"].shape
    assert Cp == Cp_w, (Cp, Cp_w)
    tn = 256 if Np % 256 == 0 else 128
    grid = (N, Ho, Np // tn)

    row_specs = [
        pl.BlockSpec((1, 1, Wp, Cp),
                     _make_row_index_map(base_offset + ky * dilation))
        for ky in range(3)
    ]
    kernel = functools.partial(_conv3x3_kernel, Wo=Wo, dil=dilation,
                               woff=base_offset)
    y, s = pl.pallas_call(
        kernel,
        out_shape=(jax.ShapeDtypeStruct((N, Ho, Wo, Np), jnp.bfloat16),
                   jax.ShapeDtypeStruct((N, Ho, 2, Np), jnp.float32)),
        grid=grid,
        in_specs=row_specs + [
            pl.BlockSpec((9, Cp, tn), lambda n, y, j: (0, 0, j))],  # resident W
        out_specs=(pl.BlockSpec((1, 1, Wo, tn), lambda n, y, j: (n, y, 0, j)),
                   pl.BlockSpec((1, 1, 2, tn), lambda n, y, j: (n, y, 0, j))),
        compiler_params=pltpu.CompilerParams(
            dimension_semantics=("parallel", "parallel", "parallel"),
            vmem_limit_bytes=_VMEM_LIMIT),
    )(xp, xp, xp, layer["w"])
    stats = jnp.sum(s, axis=(0, 1))                  # (2, Np)
    return y, stats


# ------------------------------------------------------------------
# Pallas kernel 3: apply BatchNorm (precomputed batch stats) + optional ReLU
# ------------------------------------------------------------------
def _bn_kernel(y_ref, s_ref, o_ref, *, inv_m, eps, relu):
    y = y_ref[...].astype(jnp.float32)               # (tm, tc)
    s = s_ref[...]                                   # (2, tc): [sum, sumsq]
    mean = s[0:1, :] * inv_m
    var = jnp.maximum(s[1:2, :] * inv_m - mean * mean, 0.0)   # biased (train BN)
    out = (y - mean) * jax.lax.rsqrt(var + eps)      # gamma=1, beta=0
    if relu:
        out = jnp.maximum(out, 0.0)
    o_ref[...] = out.astype(o_ref.dtype)


def bn_apply(y2d, stats, *, m_total, eps, relu, out_dtype=jnp.bfloat16):
    Mp, Np = y2d.shape
    tm, Mp2 = _choose_m_tiling(Mp, 1024)
    if Mp2 != Mp:
        y2d = jnp.pad(y2d, ((0, Mp2 - Mp), (0, 0)))
    if Np <= 512:
        tc = Np
    else:
        tc = 256 if Np % 256 == 0 else 128
    kernel = functools.partial(_bn_kernel, inv_m=1.0 / float(m_total),
                               eps=eps, relu=relu)
    return pl.pallas_call(
        kernel,
        out_shape=jax.ShapeDtypeStruct((Mp2, Np), out_dtype),
        grid=(Mp2 // tm, Np // tc),
        in_specs=[pl.BlockSpec((tm, tc), lambda i, j: (i, j)),
                  pl.BlockSpec((2, tc), lambda i, j: (0, j))],
        out_specs=pl.BlockSpec((tm, tc), lambda i, j: (i, j)),
        compiler_params=pltpu.CompilerParams(
            dimension_semantics=("parallel", "parallel"),
            vmem_limit_bytes=_VMEM_LIMIT),
    )(y2d, stats)


# ------------------------------------------------------------------
# Conv wrappers
# ------------------------------------------------------------------
def conv1x1(x, layer, *, out_dtype=jnp.bfloat16):
    y, _, M, (N, H, W) = _conv1x1_matmul(x, layer, with_stats=False,
                                         out_dtype=out_dtype)
    return y[:M, :layer["cout"]].reshape(N, H, W, layer["cout"])


def conv1x1_bn(x, layer, *, relu, eps=1e-5):
    y, stats, M, (N, H, W) = _conv1x1_matmul(x, layer, with_stats=True,
                                             out_dtype=jnp.bfloat16)
    out = bn_apply(y, stats, m_total=M, eps=eps, relu=relu)
    return out[:M, :layer["cout"]].reshape(N, H, W, layer["cout"])


def _conv3x3_bn_relu_core(xp, layer, *, Ho, Wo, dilation, base_offset,
                          relu=True, eps=1e-5):
    y, stats = _conv3x3_matmul(xp, layer, Ho=Ho, Wo=Wo, dilation=dilation,
                               base_offset=base_offset)
    N, _, _, Np = y.shape
    M = N * Ho * Wo
    out = bn_apply(y.reshape(M, Np), stats, m_total=M, eps=eps, relu=relu)
    return out[:M, :layer["cout"]].reshape(N, Ho, Wo, layer["cout"])


def conv3x3_bn_relu(x, layer, *, dilation=1, relu=True, eps=1e-5):
    """'Same' dilated 3x3 ConvBNReLU (padding == dilation); pads x itself."""
    N, H, W, C = x.shape
    Cp = layer["w"].shape[1]
    pad = dilation
    xp = jnp.pad(x.astype(jnp.bfloat16),
                 ((0, 0), (pad, pad), (pad, pad), (0, Cp - C)))
    return _conv3x3_bn_relu_core(xp, layer, Ho=H, Wo=W, dilation=dilation,
                                 base_offset=0, relu=relu, eps=eps)


# ------------------------------------------------------------------
# Bilinear resize, align_corners=True (JAX glue; blends in input dtype)
# ------------------------------------------------------------------
def _lin_idx(in_size, out_size):
    if in_size == 1:
        i0 = jnp.zeros((out_size,), jnp.int32)
        return i0, i0, jnp.zeros((out_size,), jnp.float32)
    pos = jnp.linspace(0.0, float(in_size - 1), out_size)
    i0 = jnp.clip(jnp.floor(pos).astype(jnp.int32), 0, in_size - 2)
    i1 = i0 + 1
    w = (pos - i0.astype(jnp.float32)).astype(jnp.float32)
    return i0, i1, w


def resize_bilinear_ac(x, out_h, out_w):
    N, H, W, C = x.shape
    if H == out_h and W == out_w:
        return x
    dt = x.dtype
    y0, y1, wy = _lin_idx(H, out_h)
    x0, x1, wx = _lin_idx(W, out_w)
    wy = wy.astype(dt)
    wx = wx.astype(dt)
    r0 = jnp.take(x, y0, axis=1)
    r1 = jnp.take(x, y1, axis=1)
    rows = r0 * (1 - wy)[None, :, None, None] + r1 * wy[None, :, None, None]
    c0 = jnp.take(rows, x0, axis=2)
    c1 = jnp.take(rows, x1, axis=2)
    out = c0 * (1 - wx)[None, None, :, None] + c1 * wx[None, None, :, None]
    return out.astype(dt)


# ------------------------------------------------------------------
# Parameters: kaiming_normal_(a=1); biases are zero-init in the reference and
# cancelled by BN, so they are dropped.  Weights are transposed, channel- and
# cout-padded to multiples of 128, and cast to bf16 ONCE at init time.
# ------------------------------------------------------------------
def make_conv_layer(key, cout, cin, ksize):
    fan_in = cin * ksize * ksize
    std = (1.0 / fan_in) ** 0.5                       # a=1 -> sqrt(1/fan_in)
    w = jax.random.normal(key, (cout, cin, ksize, ksize), jnp.float32) * std
    Np = _round_up(cout, 128)
    Cp = _round_up(cin, 128)
    if ksize == 1:
        wm = jnp.zeros((Cp, Np), jnp.bfloat16).at[:cin, :cout].set(
            w[:, :, 0, 0].T.astype(jnp.bfloat16))
    else:
        wt = jnp.transpose(w, (2, 3, 1, 0)).reshape(ksize * ksize, cin, cout)
        wm = jnp.zeros((ksize * ksize, Cp, Np), jnp.bfloat16).at[
            :, :cin, :cout].set(wt.astype(jnp.bfloat16))
    return {"w": wm, "cout": cout, "cin": cin, "k": ksize}


def init_params(key, n_classes):
    ks = jax.random.split(key, 12)
    return {
        "bb1": make_conv_layer(ks[0], 256, 3, 1),      # backbone stub -> x1
        "bb4": make_conv_layer(ks[1], 2048, 3, 1),     # backbone stub -> x4
        "ff1": make_conv_layer(ks[2], 256, 2048, 3),   # dilation 18
        "ff2": make_conv_layer(ks[3], 256, 2048, 3),   # dilation 12
        "ff3": make_conv_layer(ks[4], 256, 2048, 3),   # dilation 6
        "ff4": make_conv_layer(ks[5], 256, 2048, 3),   # dilation 1
        "ff5": make_conv_layer(ks[6], 256, 2048, 1),   # on pooled features
        "ffo": make_conv_layer(ks[7], 256, 1280, 1),   # ASPP fuse
        "low": make_conv_layer(ks[8], 48, 256, 1),     # conv_low (+bn1)
        "cc1": make_conv_layer(ks[9], 256, 304, 3),    # conv_cat[0]
        "cc2": make_conv_layer(ks[10], 256, 256, 3),   # conv_cat[1]
        "out": make_conv_layer(ks[11], n_classes, 256, 1),  # conv_out (no bias)
    }


# ------------------------------------------------------------------
# HighOrder forward
# ------------------------------------------------------------------
_ASPP_PAD = 18   # max dilation; one shared padded copy of x4 for ff1..ff4


def high_order_forward(x_nchw, p):
    x = jnp.transpose(x_nchw, (0, 2, 3, 1)).astype(jnp.bfloat16)   # NCHW->NHWC
    N, H, W, _ = x.shape

    # TODO(synk): resnet(101, 16) backbone not provided; deterministic stub.
    x1 = conv1x1(x[:, ::4, ::4, :], p["bb1"])         # (N, H/4,  W/4,  256)
    x4 = conv1x1(x[:, ::16, ::16, :], p["bb4"])       # (N, H/16, W/16, 2048)

    # ---- Feature_Fusion (ASPP-like) ----
    H4, W4 = x4.shape[1], x4.shape[2]
    xp = jnp.pad(x4, ((0, 0), (_ASPP_PAD, _ASPP_PAD),
                      (_ASPP_PAD, _ASPP_PAD), (0, 0)))   # padded ONCE, shared
    feats = []
    for name, d in (("ff1", 18), ("ff2", 12), ("ff3", 6), ("ff4", 1)):
        feats.append(_conv3x3_bn_relu_core(
            xp, p[name], Ho=H4, Wo=W4, dilation=d, base_offset=_ASPP_PAD - d))
    pooled = jnp.mean(x4.astype(jnp.float32), axis=(1, 2),
                      keepdims=True).astype(jnp.bfloat16)   # AdaptiveAvgPool2d
    feat5 = conv1x1_bn(pooled, p["ff5"], relu=True)
    feat5 = resize_bilinear_ac(feat5, H4, W4)
    feat = jnp.concatenate(feats + [feat5], axis=-1)        # 1280 ch
    feat = conv1x1_bn(feat, p["ffo"], relu=True)

    # ---- decoder ----
    H1, W1 = x1.shape[1], x1.shape[2]
    low = conv1x1_bn(x1, p["low"], relu=False)              # conv_low + bn1
    feat = resize_bilinear_ac(feat, H1, W1)
    cat = jnp.concatenate([feat, low], axis=-1)             # 304 ch
    final = conv3x3_bn_relu(cat, p["cc1"], dilation=1)
    final = conv3x3_bn_relu(final, p["cc2"], dilation=1)
    final = conv1x1(final, p["out"], out_dtype=jnp.float32)
    final = resize_bilinear_ac(final, H, W)
    return jnp.transpose(final, (0, 3, 1, 2))               # back to NCHW


if __name__ == "__main__":
    n_classes = 5
    key = jax.random.PRNGKey(0)
    kx, kp = jax.random.split(key)
    x = jax.random.normal(kx, (2, 3, 32, 32), jnp.float32)  # NCHW like PyTorch
    params = init_params(kp, n_classes)
    out = jax.block_until_ready(high_order_forward(x, params))
    assert out.shape == (2, n_classes, 32, 32), out.shape
    assert bool(jnp.all(jnp.isfinite(out)))
    print("KERNEL_OK")
</pallas_src>

<mosaic_0001>
module attributes {stable_mosaic.version = 11 : i64} {
  func.func @_mm_kernel(%arg0: i32, %arg1: i32, %arg2: memref<128x128xbf16, #tpu.memory_space<vmem>>, %arg3: memref<128x256xbf16, #tpu.memory_space<vmem>>, %arg4: memref<128x256xbf16, #tpu.memory_space<vmem>>) attributes {dimension_semantics = [#tpu.dimension_semantics<parallel>, #tpu.dimension_semantics<parallel>], iteration_bounds = array<i64: 1, 1>, scalar_prefetch = 0 : i64, scratch_operands = 0 : i64, tpu.core_type = #tpu.core_type<tc>, window_params = [{transform_indices = @transform_0, window_bounds = array<i64: 128, 128>}, {transform_indices = @transform_1, window_bounds = array<i64: 128, 256>}, {transform_indices = @transform_2, window_bounds = array<i64: 128, 256>}]} {
    %c0 = arith.constant 0 : index
    %c0_0 = arith.constant 0 : index
    %0 = vector.load %arg2[%c0, %c0_0] : memref<128x128xbf16, #tpu.memory_space<vmem>>, vector<128x128xbf16>
    %c0_1 = arith.constant 0 : index
    %c0_2 = arith.constant 0 : index
    %1 = vector.load %arg3[%c0_1, %c0_2] : memref<128x256xbf16, #tpu.memory_space<vmem>>, vector<128x256xbf16>
    %cst = arith.constant dense<0.000000e+00> : vector<128x256xf32>
    %2 = tpu.matmul %0, %1, %cst {dimension_numbers = #tpu.dot_dimension_numbers<[1], [0], [0], [1], [0, 0, 1, 1], [], []>} : vector<128x128xbf16>, vector<128x256xbf16>, vector<128x256xf32> -> vector<128x256xf32>
    %3 = arith.truncf %2 : vector<128x256xf32> to vector<128x256xbf16>
    %c0_3 = arith.constant 0 : index
    %c0_4 = arith.constant 0 : index
    %4 = vector.load %arg4[%c0_3, %c0_4] : memref<128x256xbf16, #tpu.memory_space<vmem>>, vector<128x256xbf16>
    tpu.vector_store %arg4[%c0_3, %c0_4], %3 {strides = array<i32>} : memref<128x256xbf16, #tpu.memory_space<vmem>>, vector<128x256xbf16>,
    return
  }
  func.func @transform_0(%arg0: i32, %arg1: i32) -> (i32, i32) {
    %c0_i32 = arith.constant 0 : i32
    %c0_i32_0 = arith.constant 0 : i32
    return %arg0, %c0_i32 : i32, i32
  }
  func.func @transform_1(%arg0: i32, %arg1: i32) -> (i32, i32) {
    %c0_i32 = arith.constant 0 : i32
    %c0_i32_0 = arith.constant 0 : i32
    return %c0_i32, %arg1 : i32, i32
  }
  func.func @transform_2(%arg0: i32, %arg1: i32) -> (i32, i32) {
    %c0_i32 = arith.constant 0 : i32
    return %arg0, %arg1 : i32, i32
  }
}

</mosaic_0001>

<bundles_post_ra>
// kernel: tpu_custom_call.1
= control target key start
LH: loop header
LB: loop body
LE: loop exit
PB: predicated region body
PF: predicated region fallthrough
CT: control target
= control target key end

     0   :  { %7 = vsyncpa [#allocation3], 0  ;;  %s701_s0 = inlined_call_operand.hbm [shape: bf16[128,128], index: 0, kind: input, shape index: {}]   ;;  %s702_s1 = inlined_call_operand.hbm [shape: bf16[128,256], index: 1, kind: input, shape index: {}]   ;;  %s703_s2 = inlined_call_operand.hbm [shape: bf16[128,256], index: 2, kind: output, shape index: {}]  }
   0x1   :  { %8 = vsyncpa [#allocation6], 0 }
   0x2   :  { %9 = vsyncpa [#allocation4], 0  ;;  %s628_s9 = smov [#allocation2]   ;;  %s556_s13 = scalar_lea.hbm %s701_s0, 1024 }
   0x3   :  { %s15_s10 = sshll.u32 %s628_s9, 4  ;;  %p557_p0 = scmp.ne.s32.totalorder %s701_s0, %s556_s13  ;;  %s16_s10 = int_to_ptr.vmem [resolvable:$true] %s15_s10 }
   0x4   :  { %p560_p1 = scmp.lt.u32.totalorder %s556_s13, %s701_s0 }
   0x6   :  { %p562_p2 = pnand %p560_p1, %p557_p0 }
   0x8   :  { %565 = shalt.err (!%p562_p2)
}
   0x9   :  { %s566_s18 = scalar_lea.vmem %s16_s10, 1024  ;;  %p571_p4 = scmp.lt.s32.totalorder %s16_s10, %s16_s10 }
   0xa   :  { %p567_p3 = scmp.ne.s32.totalorder %s16_s10, %s566_s18  ;;  %p572_p5 = scmp.lt.s32.totalorder %s566_s18, %s566_s18 }
   0xc   :  { %p573_p6 = por %p572_p5, %p571_p4 }
   0xe   :  { %p574_p7 = pnand %p573_p6, %p567_p3 }
  0x10   :  { %577 = shalt.err (!%p574_p7)
}
  0x11   :  { %s629_s19 = smov 64   ;;  %s630_s20 = smov 4  }
  0x12   :  { %21 = dma.hbm_to_vmem [thread:$0]  %s701_s0, 1024, %s16_s10, [#allocation3], %s629_s19, %s629_s19, %s630_s20  }
  0x13   :  { %s631_s23 = smov [#allocation5]   ;;  %s578_s27 = scalar_lea.hbm %s702_s1, 2048 }
  0x14   :  { %s27_s24 = sshll.u32 %s631_s23, 4  ;;  %p579_p8 = scmp.ne.s32.totalorder %s702_s1, %s578_s27  ;;  %s28_s24 = int_to_ptr.vmem [resolvable:$true] %s27_s24 }
  0x15   :  { %p582_p9 = scmp.lt.u32.totalorder %s578_s27, %s702_s1 }
  0x17   :  { %p584_p10 = pnand %p582_p9, %p579_p8 }
  0x19   :  { %587 = shalt.err (!%p584_p10)
}
  0x1a   :  { %s588_s4 = scalar_lea.vmem %s28_s24, 2048  ;;  %p593_p12 = scmp.lt.s32.totalorder %s28_s24, %s28_s24 }
  0x1b   :  { %p589_p11 = scmp.ne.s32.totalorder %s28_s24, %s588_s4  ;;  %p594_p13 = scmp.lt.s32.totalorder %s588_s4, %s588_s4 }
  0x1d   :  { %p595_p0 = por %p594_p13, %p593_p12 }
  0x1f   :  { %p596_p1 = pnand %p595_p0, %p589_p11 }
  0x21   :  { %599 = shalt.err (!%p596_p1)
}
  0x22   :  { %s632_s0 = smov 128   ;;  %s633_s5 = smov 8  }
  0x23   :  { %33 = dma.hbm_to_vmem [thread:$0]  %s702_s1, 2048, %s28_s24, [#allocation6], %s632_s0, %s632_s0, %s633_s5  }
  0x24   :  { %622 = dma.done.wait [#allocation3], 1024  }
  0x25   :  { %623 = vsyncadd [#allocation3], 4294966272 }
  0x26   :  { %624 = dma.done.wait [#allocation6], 2048  }
  0x27   :  { %625 = vsyncadd [#allocation6], 4294965248  ;;  %v634_v0 = vmov 0   ;;  %v524_v1 = vld [vmem:[#allocation5 + $0x4] ss:$8 sps:$4 sm:$0xff]   ;;  %v552_v21 = vld [vmem:[#allocation2 + $0x10] sm:$0xff]  }
  0x28   :  { %233 = vmatprep.mubr.bf16.mxu0 %v634_v0  ;;  %273 = vmatprep.mubr.bf16.mxu1 %v634_v0  ;;  %v526_v2 = vld [vmem:[#allocation5] ss:$8 sps:$4 sm:$0xff]   ;;  %v527_v3 = vld [vmem:[#allocation5 + $0x14] ss:$8 sps:$4 sm:$0xff]   ;;  %v529_v4 = vld [vmem:[#allocation5 + $0x10] ss:$8 sps:$4 sm:$0xff]  }
  0x29   :  { %201 = vmatprep.subr.bf16.mxu0 %v524_v1  ;;  %500 = vmatprep.subr.bf16.mxu1 %v524_v1  ;;  %v530_v5 = vld [vmem:[#allocation5 + $0x24] ss:$8 sps:$4 sm:$0xff]   ;;  %v532_v6 = vld [vmem:[#allocation5 + $0x20] ss:$8 sps:$4 sm:$0xff]   ;;  %v533_v7 = vld [vmem:[#allocation5 + $0x34] ss:$8 sps:$4 sm:$0xff]  }
  0x2a   :  { %202 = vmatpush1.bf16.msra.mxu0 %v526_v2  ;;  %508 = vmatpush1.bf16.msra.mxu1 %v526_v2  ;;  %v535_v8 = vld [vmem:[#allocation5 + $0x30] ss:$8 sps:$4 sm:$0xff]   ;;  %v536_v9 = vld [vmem:[#allocation5 + $0x44] ss:$8 sps:$4 sm:$0xff]   ;;  %v538_v10 = vld [vmem:[#allocation5 + $0x40] ss:$8 sps:$4 sm:$0xff]  }
  0x2b   :  { %203 = vmatprep.subr.bf16.mxu0 %v527_v3  ;;  %501 = vmatprep.subr.bf16.mxu1 %v527_v3  ;;  %v539_v11 = vld [vmem:[#allocation5 + $0x54] ss:$8 sps:$4 sm:$0xff]   ;;  %v541_v12 = vld [vmem:[#allocation5 + $0x50] ss:$8 sps:$4 sm:$0xff]   ;;  %v542_v13 = vld [vmem:[#allocation5 + $0x64] ss:$8 sps:$4 sm:$0xff]  }
  0x2c   :  { %v544_v14 = vld [vmem:[#allocation5 + $0x60] ss:$8 sps:$4 sm:$0xff]   ;;  %v545_v15 = vld [vmem:[#allocation5 + $0x74] ss:$8 sps:$4 sm:$0xff]   ;;  %v547_v16 = vld [vmem:[#allocation5 + $0x70] ss:$8 sps:$4 sm:$0xff]  }
  0x2d   :  { %v548_v17 = vld [vmem:[#allocation2] sm:$0xff]   ;;  %v550_v19 = vld [vmem:[#allocation2 + $0x8] sm:$0xff]   ;;  %v553_v22 = vld [vmem:[#allocation2 + $0x30] sm:$0xff]   ;;  %s635_s1 = smov [#allocation7]  }
  0x2e   :  { %204 = vmatpush1.bf16.msra.mxu0 %v529_v4  ;;  %509 = vmatpush1.bf16.msra.mxu1 %v529_v4  ;;  %v549_v18 = vld [vmem:[#allocation2 + $0x20] sm:$0xff]   ;;  %v551_v20 = vld [vmem:[#allocation2 + $0x28] sm:$0xff]   ;;  %v554_v23 = vld [vmem:[#allocation2 + $0x18] sm:$0xff]   ;;  %s431_s8 = sshll.u32 %s635_s1, 4  ;;  %s432_s8 = int_to_ptr.vmem [resolvable:$true] %s431_s8 }
  0x2f   :  { %205 = vmatprep.subr.bf16.mxu0 %v530_v5  ;;  %502 = vmatprep.subr.bf16.mxu1 %v530_v5  ;;  %v555_v24 = vld [vmem:[#allocation2 + $0x38] sm:$0xff]   ;;  %s600_s9 = scalar_lea.vmem %s432_s8, 2048  ;;  %p605_p3 = scmp.lt.s32.totalorder %s432_s8, %s432_s8 }
  0x30   :  { %p601_p2 = scmp.ne.s32.totalorder %s432_s8, %s600_s9  ;;  %p606_p4 = scmp.lt.s32.totalorder %s600_s9, %s600_s9 }
  0x32   :  { %206 = vmatpush1.bf16.msra.mxu0 %v532_v6  ;;  %510 = vmatpush1.bf16.msra.mxu1 %v532_v6  ;;  %p607_p5 = por %p606_p4, %p605_p3 }
  0x33   :  { %207 = vmatprep.subr.bf16.mxu0 %v533_v7  ;;  %503 = vmatprep.subr.bf16.mxu1 %v533_v7 }
  0x34   :  { %p608_p6 = pnand %p607_p5, %p601_p2 }
  0x36   :  { %208 = vmatpush1.bf16.msra.mxu0 %v535_v8  ;;  %511 = vmatpush1.bf16.msra.mxu1 %v535_v8 }
  0x37   :  { %209 = vmatprep.subr.bf16.mxu0 %v536_v9  ;;  %504 = vmatprep.subr.bf16.mxu1 %v536_v9 }
  0x3a   :  { %210 = vmatpush1.bf16.msra.mxu0 %v538_v10  ;;  %512 = vmatpush1.bf16.msra.mxu1 %v538_v10 }
  0x3b   :  { %211 = vmatprep.subr.bf16.mxu0 %v539_v11  ;;  %505 = vmatprep.subr.bf16.mxu1 %v539_v11 }
  0x3e   :  { %212 = vmatpush1.bf16.msra.mxu0 %v541_v12  ;;  %513 = vmatpush1.bf16.msra.mxu1 %v541_v12 }
  0x3f   :  { %213 = vmatprep.subr.bf16.mxu0 %v542_v13  ;;  %506 = vmatprep.subr.bf16.mxu1 %v542_v13 }
  0x42   :  { %214 = vmatpush1.bf16.msra.mxu0 %v544_v14  ;;  %514 = vmatpush1.bf16.msra.mxu1 %v544_v14 }
  0x43   :  { %215 = vmatprep.subr.bf16.mxu0 %v545_v15  ;;  %507 = vmatprep.subr.bf16.mxu1 %v545_v15 }
  0x46   :  { %216 = vmatpush1.bf16.msra.mxu0 %v547_v16  ;;  %515 = vmatpush1.bf16.msra.mxu1 %v547_v16 }
  0x49   :  { %234 = vmatmul.mubr.bf16.vlgmr.msra.gmra.mrb[0].mxu0 %v548_v17  ;;  %274 = vmatmul.mubr.bf16.vlgmr.msra.gmra.mrb[0].mxu1 %v549_v18 }
  0x4a   :  { %243 = vmatprep.mubr.bf16.mxu0 %v634_v0  ;;  %283 = vmatprep.mubr.bf16.mxu1 %v634_v0 }
  0x51   :  { %244 = vmatmul.mubr.bf16.gmra.mrb[4].mxu0 %v550_v19  ;;  %284 = vmatmul.mubr.bf16.gmra.mrb[4].mxu1 %v551_v20 }
  0x52   :  { %253 = vmatprep.mubr.bf16.mxu0 %v634_v0  ;;  %293 = vmatprep.mubr.bf16.mxu1 %v634_v0 }
  0x59   :  { %254 = vmatmul.mubr.bf16.gmra.mrb[8].mxu0 %v552_v21  ;;  %294 = vmatmul.mubr.bf16.gmra.mrb[8].mxu1 %v553_v22 }
  0x5a   :  { %263 = vmatprep.mubr.bf16.mxu0 %v634_v0  ;;  %303 = vmatprep.mubr.bf16.mxu1 %v634_v0 }
  0x61   :  { %264 = vmatmul.mubr.bf16.gmra.mrb[12].mxu0 %v554_v23  ;;  %304 = vmatmul.mubr.bf16.gmra.mrb[12].mxu1 %v555_v24 }
 0x11c   :  { %v235_v25 = vpop.f32.mrb[0].mxu0  ;;  %v275_v26 = vpop.f32.mrb[0].mxu1 }
 0x11d   :  { %v237_v27 = vpop.f32.mrb[1].mxu0  ;;  %v277_v28 = vpop.f32.mrb[1].mxu1 }
 0x11e   :  { %v484_v29 = vpack.c.bf16 %v237_v27, %v235_v25  ;;  %v492_v30 = vpack.c.bf16 %v277_v28, %v275_v26  ;;  %v239_v31 = vpop.f32.mrb[2].mxu0  ;;  %v279_v32 = vpop.f32.mrb[2].mxu1 }
 0x11f   :  { %v241_v33 = vpop.f32.mrb[3].mxu0  ;;  %v281_v34 = vpop.f32.mrb[3].mxu1 }
 0x120   :  { %410 = vst [vmem:[#allocation7] sm:$0xff] %v484_v29  ;;  %418 = vst [vmem:[#allocation7 + $0x40] sm:$0xff] %v492_v30  ;;  %v485_v35 = vpack.c.bf16 %v241_v33, %v239_v31  ;;  %v493_v36 = vpack.c.bf16 %v281_v34, %v279_v32 }
 0x122   :  { %411 = vst [vmem:[#allocation7 + $0x8] sm:$0xff] %v485_v35  ;;  %419 = vst [vmem:[#allocation7 + $0x48] sm:$0xff] %v493_v36 }
 0x124   :  { %v245_v37 = vpop.f32.mrb[4].mxu0  ;;  %v285_v38 = vpop.f32.mrb[4].mxu1 }
 0x125   :  { %v247_v39 = vpop.f32.mrb[5].mxu0  ;;  %v287_v40 = vpop.f32.mrb[5].mxu1 }
 0x126   :  { %v486_v41 = vpack.c.bf16 %v247_v39, %v245_v37  ;;  %v494_v42 = vpack.c.bf16 %v287_v40, %v285_v38  ;;  %v249_v43 = vpop.f32.mrb[6].mxu0  ;;  %v289_v44 = vpop.f32.mrb[6].mxu1 }
 0x127   :  { %v251_v45 = vpop.f32.mrb[7].mxu0  ;;  %v291_v46 = vpop.f32.mrb[7].mxu1 }
 0x128   :  { %412 = vst [vmem:[#allocation7 + $0x10] sm:$0xff] %v486_v41  ;;  %420 = vst [vmem:[#allocation7 + $0x50] sm:$0xff] %v494_v42  ;;  %v487_v47 = vpack.c.bf16 %v251_v45, %v249_v43  ;;  %v495_v48 = vpack.c.bf16 %v291_v46, %v289_v44 }
 0x12a   :  { %413 = vst [vmem:[#allocation7 + $0x18] sm:$0xff] %v487_v47  ;;  %421 = vst [vmem:[#allocation7 + $0x58] sm:$0xff] %v495_v48 }
 0x12c   :  { %v255_v49 = vpop.f32.mrb[8].mxu0  ;;  %v295_v50 = vpop.f32.mrb[8].mxu1 }
 0x12d   :  { %v257_v51 = vpop.f32.mrb[9].mxu0  ;;  %v297_v52 = vpop.f32.mrb[9].mxu1 }
 0x12e   :  { %v488_v53 = vpack.c.bf16 %v257_v51, %v255_v49  ;;  %v496_v54 = vpack.c.bf16 %v297_v52, %v295_v50  ;;  %v259_v55 = vpop.f32.mrb[10].mxu0  ;;  %v299_v56 = vpop.f32.mrb[10].mxu1 }
 0x12f   :  { %v261_v57 = vpop.f32.mrb[11].mxu0  ;;  %v301_v58 = vpop.f32.mrb[11].mxu1 }
 0x130   :  { %414 = vst [vmem:[#allocation7 + $0x20] sm:$0xff] %v488_v53  ;;  %422 = vst [vmem:[#allocation7 + $0x60] sm:$0xff] %v496_v54  ;;  %v489_v59 = vpack.c.bf16 %v261_v57, %v259_v55  ;;  %v497_v60 = vpack.c.bf16 %v301_v58, %v299_v56 }
 0x132   :  { %415 = vst [vmem:[#allocation7 + $0x28] sm:$0xff] %v489_v59  ;;  %423 = vst [vmem:[#allocation7 + $0x68] sm:$0xff] %v497_v60 }
 0x134   :  { %v265_v61 = vpop.f32.mrb[12].mxu0  ;;  %v305_v62 = vpop.f32.mrb[12].mxu1 }
 0x135   :  { %v267_v63 = vpop.f32.mrb[13].mxu0  ;;  %v307_v0 = vpop.f32.mrb[13].mxu1 }
 0x136   :  { %v490_v1 = vpack.c.bf16 %v267_v63, %v265_v61  ;;  %v498_v2 = vpack.c.bf16 %v307_v0, %v305_v62  ;;  %v269_v3 = vpop.f32.mrb[14].mxu0  ;;  %v309_v4 = vpop.f32.mrb[14].mxu1 }
 0x137   :  { %v271_v5 = vpop.f32.mrb[15].mxu0  ;;  %v311_v6 = vpop.f32.mrb[15].mxu1 }
 0x138   :  { %416 = vst [vmem:[#allocation7 + $0x30] sm:$0xff] %v490_v1  ;;  %424 = vst [vmem:[#allocation7 + $0x70] sm:$0xff] %v498_v2  ;;  %v491_v7 = vpack.c.bf16 %v271_v5, %v269_v3  ;;  %v499_v8 = vpack.c.bf16 %v311_v6, %v309_v4 }
 0x13a   :  { %417 = vst [vmem:[#allocation7 + $0x38] sm:$0xff] %v491_v7  ;;  %425 = vst [vmem:[#allocation7 + $0x78] sm:$0xff] %v499_v8 }
 0x13b   :  { %611 = shalt.err (!%p608_p6)
}
 0x13c   :  { %s612_s12 = scalar_lea.hbm %s703_s2, 2048 }
 0x13d   :  { %p613_p7 = scmp.ne.s32.totalorder %s703_s2, %s612_s12  ;;  %p616_p8 = scmp.lt.u32.totalorder %s612_s12, %s703_s2 }
 0x13f   :  { %p618_p9 = pnand %p616_p8, %p613_p7 }
 0x141   :  { %621 = shalt.err (!%p618_p9)
}
 0x142   :  { %437 = dma.vmem_to_hbm [thread:$0]  %s432_s8, 2048, %s703_s2, [#allocation4], %s632_s0, %s632_s0, %s633_s5  }
 0x143   :  { %626 = dma.done.wait [#allocation4], 2048  }
 0x144   :  { %627 = vsyncadd [#allocation4], 4294965248 }
 0x145   :  { %441 = vsyncpa [#allocation3], 1 }
 0x146   :  { %442 = vsyncpa [#allocation6], 1 }
 0x147   :  { %443 = vsyncpa [#allocation4], 1 }

</bundles_post_ra>
